<compile_context>
chip_gen: v5e
topology: v5e:2x2
jax: 0.10.0
libtpu: 0.0.40
codegen_flags: <defaults>
</compile_context>

<pallas_src>
import jax
import jax.numpy as jnp
from jax.experimental import pallas as pl
from jax.experimental.pallas import tpu as pltpu

INPUT_SIZE = 8       # diabetes.csv has 8 feature columns
HIDDEN_SIZE = 125    # logical hidden size (matches the PyTorch module)
HIDDEN_PAD = 128     # padded hidden size used inside the kernel
OUTPUT_SIZE = 1
TILE_B_MAX = 2048    # max batch rows per grid step (amortizes ~0.35 us/step)
SPLIT_MIN = 1024     # batches >= this get >= 2 balanced tiles (v7x megacore)


def mlp_kernel(x_ref,
               w1_ref, b1_ref,
               w2_ref, b2_ref,
               w3_ref, b3_ref,
               w4_ref, b4_ref,
               o_ref):
    # Weights/biases arrive pre-folded (see _fold_and_pad_params): every hidden
    # layer is a plain tanh (EUP slot), no per-element affine on the VALU.
    t = jnp.tanh(jnp.dot(x_ref[...], w1_ref[...],
                         preferred_element_type=jnp.float32) + b1_ref[...])
    t = jnp.tanh(jnp.dot(t, w2_ref[...],
                         preferred_element_type=jnp.float32) + b2_ref[...])
    t = jnp.tanh(jnp.dot(t, w3_ref[...],
                         preferred_element_type=jnp.float32) + b3_ref[...])
    z = jnp.dot(t, w4_ref[...],
                preferred_element_type=jnp.float32) + b4_ref[...]
    # Single affine only on the (tb, 1) output: sigmoid(z4) = 0.5*tanh(0.5*z4)+0.5
    # with the 0.5 already folded into w4/b4.
    o_ref[...] = (0.5 * jnp.tanh(z) + 0.5).astype(o_ref.dtype)


def _fold_and_pad_params(params):
    """Zero-pad hidden 125 -> 128 and fold the sigmoid affine pieces into W/b.

    With t_l := tanh(0.5 * z_l)  (so sigmoid(z_l) = 0.5*t_l + 0.5):
      layer 1:    t1 = tanh(x @ (0.5*W1) + 0.5*b1)
      layer l>1:  0.5*z_l = (0.5*t_{l-1} + 0.5) @ (0.5*W_l) + 0.5*b_l
                          = t_{l-1} @ (0.25*W_l) + (0.25*colsum(W_l) + 0.5*b_l)
      output:     y = 0.5*t4 + 0.5
    The 0.5 / 0.25 scalings are exact in f32; only the colsum adds a rounding.
    Padding is exact: padded lanes give tanh(0) = 0 and padded weight rows are 0,
    and padded bias columns stay 0 (zero column -> zero colsum).
    """
    p = HIDDEN_PAD - HIDDEN_SIZE

    w1 = jnp.pad(0.5 * params["w1"], ((0, 0), (0, p)))
    b1 = jnp.pad(0.5 * params["b1"], ((0, 0), (0, p)))

    def fold(w, b, pad_cols):
        wf = 0.25 * w
        bf = 0.5 * b + jnp.sum(wf, axis=0, keepdims=True)
        return (jnp.pad(wf, ((0, p), (0, pad_cols))),
                jnp.pad(bf, ((0, 0), (0, pad_cols))))

    w2, b2 = fold(params["w2"], params["b2"], p)
    w3, b3 = fold(params["w3"], params["b3"], p)
    w4, b4 = fold(params["w4"], params["b4"], 0)
    return w1, b1, w2, b2, w3, b3, w4, b4


def _choose_batch_tile(b_up8):
    """Batch tile: as big as possible (amortize per-step overhead), but split
    large batches into an even number of balanced tiles so both TensorCores
    get work on v7x. `b_up8` is the batch rounded up to a multiple of 8."""
    if b_up8 < SPLIT_MIN:
        return b_up8                      # single tile, no split overhead
    n_tiles = max(2, pl.cdiv(b_up8, TILE_B_MAX))
    if n_tiles % 2:
        n_tiles += 1                      # even count -> balanced across 2 TCs
    return ((pl.cdiv(b_up8, n_tiles) + 7) // 8) * 8


@jax.jit
def simple_nn_1(x, params):
    """x: (B, INPUT_SIZE) float32. params: dict w1..b4 (logical 125 hidden).
    Returns (B, 1) float32 = sigmoid(fc4(sig(fc3(sig(fc2(sig(fc1(x))))))))."""
    B = x.shape[0]
    w1, b1, w2, b2, w3, b3, w4, b4 = _fold_and_pad_params(params)

    b_up8 = ((B + 7) // 8) * 8
    tb = _choose_batch_tile(b_up8)
    b_pad = pl.cdiv(B, tb) * tb
    x_p = jnp.pad(x, ((0, b_pad - B), (0, 0))) if b_pad != B else x

    def resident(arr):
        # Full-array block, same block every grid step -> DMAed once, stays
        # resident in VMEM for the whole batch loop.
        return pl.BlockSpec(arr.shape, lambda i: (0, 0))

    out = pl.pallas_call(
        mlp_kernel,
        out_shape=jax.ShapeDtypeStruct((b_pad, OUTPUT_SIZE), jnp.float32),
        grid=(b_pad // tb,),
        in_specs=[
            pl.BlockSpec((tb, INPUT_SIZE), lambda i: (i, 0)),   # x tile
            resident(w1), resident(b1),
            resident(w2), resident(b2),
            resident(w3), resident(b3),
            resident(w4), resident(b4),
        ],
        out_specs=pl.BlockSpec((tb, OUTPUT_SIZE), lambda i: (i, 0)),
        compiler_params=pltpu.CompilerParams(
            dimension_semantics=("parallel",),   # batch tiles across TCs (v7x)
            vmem_limit_bytes=32 * 1024 * 1024,
        ),
    )(x_p, w1, b1, w2, b2, w3, b3, w4, b4)

    return out[:B]


def init_params(key):
    """Deterministic param init (torch-Linear-style uniform bounds), logical sizes."""
    ks = jax.random.split(key, 8)

    def linear(kw, kb, fan_in, fan_out):
        bound = 1.0 / jnp.sqrt(fan_in)
        w = jax.random.uniform(kw, (fan_in, fan_out), jnp.float32, -bound, bound)
        b = jax.random.uniform(kb, (1, fan_out), jnp.float32, -bound, bound)
        return w, b

    w1, b1 = linear(ks[0], ks[1], INPUT_SIZE, HIDDEN_SIZE)
    w2, b2 = linear(ks[2], ks[3], HIDDEN_SIZE, HIDDEN_SIZE)
    w3, b3 = linear(ks[4], ks[5], HIDDEN_SIZE, HIDDEN_SIZE)
    w4, b4 = linear(ks[6], ks[7], HIDDEN_SIZE, OUTPUT_SIZE)
    return {"w1": w1, "b1": b1, "w2": w2, "b2": b2,
            "w3": w3, "b3": b3, "w4": w4, "b4": b4}


def reference(x, p):
    h = jax.nn.sigmoid(x @ p["w1"] + p["b1"])
    h = jax.nn.sigmoid(h @ p["w2"] + p["b2"])
    h = jax.nn.sigmoid(h @ p["w3"] + p["b3"])
    h = jax.nn.sigmoid(h @ p["w4"] + p["b4"])
    return h


if __name__ == "__main__":
    key = jax.random.PRNGKey(0)
    k_params, k_x, k_x2 = jax.random.split(key, 3)

    params = init_params(k_params)

    # Primary check: small batch, single tile.
    batch = 8
    x = jax.random.normal(k_x, (batch, INPUT_SIZE), jnp.float32)
    out = jax.block_until_ready(simple_nn_1(x, params))
    ref = reference(x, params)
    assert out.shape == (batch, OUTPUT_SIZE), out.shape
    # Both sides use the TPU default (bf16 single-pass) MXU precision, but the
    # folded constants accumulate in f32, so rounding order differs slightly.
    assert jnp.allclose(out, ref, atol=2e-3, rtol=0.0), (
        f"max abs err {jnp.max(jnp.abs(out - ref))}")

    # Secondary check: non-multiple batch exercising padding and the balanced
    # even multi-tile split (grid of 2 tiles).  Still tiny data (80 KB).
    batch2 = 2500
    x2 = jax.random.normal(k_x2, (batch2, INPUT_SIZE), jnp.float32)
    out2 = jax.block_until_ready(simple_nn_1(x2, params))
    ref2 = reference(x2, params)
    assert out2.shape == (batch2, OUTPUT_SIZE), out2.shape
    assert jnp.allclose(out2, ref2, atol=2e-3, rtol=0.0), (
        f"max abs err {jnp.max(jnp.abs(out2 - ref2))}")

    print("KERNEL_OK")
</pallas_src>

<mosaic_0001>
module attributes {stable_mosaic.version = 11 : i64} {
  func.func @mlp_kernel(%arg0: i32, %arg1: memref<8x8xf32, #tpu.memory_space<vmem>>, %arg2: memref<8x128xf32, #tpu.memory_space<vmem>>, %arg3: memref<1x128xf32, #tpu.memory_space<vmem>>, %arg4: memref<128x128xf32, #tpu.memory_space<vmem>>, %arg5: memref<1x128xf32, #tpu.memory_space<vmem>>, %arg6: memref<128x128xf32, #tpu.memory_space<vmem>>, %arg7: memref<1x128xf32, #tpu.memory_space<vmem>>, %arg8: memref<128x1xf32, #tpu.memory_space<vmem>>, %arg9: memref<1x1xf32, #tpu.memory_space<vmem>>, %arg10: memref<8x1xf32, #tpu.memory_space<vmem>>) attributes {dimension_semantics = [#tpu.dimension_semantics<parallel>], iteration_bounds = array<i64: 1>, scalar_prefetch = 0 : i64, scratch_operands = 0 : i64, tpu.core_type = #tpu.core_type<tc>, window_params = [{transform_indices = @transform_0, window_bounds = array<i64: 8, 8>}, {pipeline_mode = #tpu.pipeline_mode<synchronous>, transform_indices = @transform_1, window_bounds = array<i64: 8, 128>}, {pipeline_mode = #tpu.pipeline_mode<synchronous>, transform_indices = @transform_2, window_bounds = array<i64: 1, 128>}, {pipeline_mode = #tpu.pipeline_mode<synchronous>, transform_indices = @transform_3, window_bounds = array<i64: 128, 128>}, {pipeline_mode = #tpu.pipeline_mode<synchronous>, transform_indices = @transform_4, window_bounds = array<i64: 1, 128>}, {pipeline_mode = #tpu.pipeline_mode<synchronous>, transform_indices = @transform_5, window_bounds = array<i64: 128, 128>}, {pipeline_mode = #tpu.pipeline_mode<synchronous>, transform_indices = @transform_6, window_bounds = array<i64: 1, 128>}, {pipeline_mode = #tpu.pipeline_mode<synchronous>, transform_indices = @transform_7, window_bounds = array<i64: 128, 1>}, {pipeline_mode = #tpu.pipeline_mode<synchronous>, transform_indices = @transform_8, window_bounds = array<i64: 1, 1>}, {transform_indices = @transform_9, window_bounds = array<i64: 8, 1>}]} {
    %c0 = arith.constant 0 : index
    %c0_0 = arith.constant 0 : index
    %0 = vector.load %arg1[%c0, %c0_0] : memref<8x8xf32, #tpu.memory_space<vmem>>, vector<8x8xf32>
    %c0_1 = arith.constant 0 : index
    %c0_2 = arith.constant 0 : index
    %1 = vector.load %arg2[%c0_1, %c0_2] : memref<8x128xf32, #tpu.memory_space<vmem>>, vector<8x128xf32>
    %cst = arith.constant dense<0.000000e+00> : vector<8x128xf32>
    %2 = tpu.matmul %0, %1, %cst {dimension_numbers = #tpu.dot_dimension_numbers<[1], [0], [0], [1], [0, 0, 1, 1], [], []>} : vector<8x8xf32>, vector<8x128xf32>, vector<8x128xf32> -> vector<8x128xf32>
    %c0_3 = arith.constant 0 : index
    %c0_4 = arith.constant 0 : index
    %3 = vector.load %arg3[%c0_3, %c0_4] : memref<1x128xf32, #tpu.memory_space<vmem>>, vector<1x128xf32>
    %4 = vector.broadcast %3 : vector<1x128xf32> to vector<8x128xf32>
    %5 = arith.addf %2, %4 : vector<8x128xf32>
    %6 = math.tanh %5 : vector<8x128xf32>
    %c0_5 = arith.constant 0 : index
    %c0_6 = arith.constant 0 : index
    %7 = vector.load %arg4[%c0_5, %c0_6] : memref<128x128xf32, #tpu.memory_space<vmem>>, vector<128x128xf32>
    %cst_7 = arith.constant dense<0.000000e+00> : vector<8x128xf32>
    %8 = tpu.matmul %6, %7, %cst_7 {dimension_numbers = #tpu.dot_dimension_numbers<[1], [0], [0], [1], [0, 0, 1, 1], [], []>} : vector<8x128xf32>, vector<128x128xf32>, vector<8x128xf32> -> vector<8x128xf32>
    %c0_8 = arith.constant 0 : index
    %c0_9 = arith.constant 0 : index
    %9 = vector.load %arg5[%c0_8, %c0_9] : memref<1x128xf32, #tpu.memory_space<vmem>>, vector<1x128xf32>
    %10 = vector.broadcast %9 : vector<1x128xf32> to vector<8x128xf32>
    %11 = arith.addf %8, %10 : vector<8x128xf32>
    %12 = math.tanh %11 : vector<8x128xf32>
    %c0_10 = arith.constant 0 : index
    %c0_11 = arith.constant 0 : index
    %13 = vector.load %arg6[%c0_10, %c0_11] : memref<128x128xf32, #tpu.memory_space<vmem>>, vector<128x128xf32>
    %cst_12 = arith.constant dense<0.000000e+00> : vector<8x128xf32>
    %14 = tpu.matmul %12, %13, %cst_12 {dimension_numbers = #tpu.dot_dimension_numbers<[1], [0], [0], [1], [0, 0, 1, 1], [], []>} : vector<8x128xf32>, vector<128x128xf32>, vector<8x128xf32> -> vector<8x128xf32>
    %c0_13 = arith.constant 0 : index
    %c0_14 = arith.constant 0 : index
    %15 = vector.load %arg7[%c0_13, %c0_14] : memref<1x128xf32, #tpu.memory_space<vmem>>, vector<1x128xf32>
    %16 = vector.broadcast %15 : vector<1x128xf32> to vector<8x128xf32>
    %17 = arith.addf %14, %16 : vector<8x128xf32>
    %18 = math.tanh %17 : vector<8x128xf32>
    %c0_15 = arith.constant 0 : index
    %c0_16 = arith.constant 0 : index
    %19 = vector.load %arg8[%c0_15, %c0_16] : memref<128x1xf32, #tpu.memory_space<vmem>>, vector<128x1xf32>
    %cst_17 = arith.constant dense<0.000000e+00> : vector<8x1xf32>
    %20 = tpu.matmul %18, %19, %cst_17 {dimension_numbers = #tpu.dot_dimension_numbers<[1], [0], [0], [1], [0, 0, 1, 1], [], []>} : vector<8x128xf32>, vector<128x1xf32>, vector<8x1xf32> -> vector<8x1xf32>
    %c0_18 = arith.constant 0 : index
    %c0_19 = arith.constant 0 : index
    %21 = vector.load %arg9[%c0_18, %c0_19] : memref<1x1xf32, #tpu.memory_space<vmem>>, vector<1x1xf32>
    %22 = vector.broadcast %21 : vector<1x1xf32> to vector<8x1xf32>
    %23 = arith.addf %20, %22 : vector<8x1xf32>
    %24 = math.tanh %23 : vector<8x1xf32>
    %cst_20 = arith.constant 5.000000e-01 : f32
    %25 = vector.broadcast %cst_20 : f32 to vector<8x1xf32>
    %26 = arith.mulf %25, %24 : vector<8x1xf32>
    %cst_21 = arith.constant 5.000000e-01 : f32
    %27 = vector.broadcast %cst_21 : f32 to vector<8x1xf32>
    %28 = arith.addf %26, %27 : vector<8x1xf32>
    %c0_22 = arith.constant 0 : index
    %c0_23 = arith.constant 0 : index
    %29 = vector.load %arg10[%c0_22, %c0_23] : memref<8x1xf32, #tpu.memory_space<vmem>>, vector<8x1xf32>
    tpu.vector_store %arg10[%c0_22, %c0_23], %28 {strides = array<i32>} : memref<8x1xf32, #tpu.memory_space<vmem>>, vector<8x1xf32>,
    return
  }
  func.func @transform_0(%arg0: i32) -> (i32, i32) {
    %c0_i32 = arith.constant 0 : i32
    %c0_i32_0 = arith.constant 0 : i32
    return %arg0, %c0_i32 : i32, i32
  }
  func.func @transform_1(%arg0: i32) -> (i32, i32) {
    %c0_i32 = arith.constant 0 : i32
    %c0_i32_0 = arith.constant 0 : i32
    %c0_i32_1 = arith.constant 0 : i32
    return %c0_i32, %c0_i32_0 : i32, i32
  }
  func.func @transform_2(%arg0: i32) -> (i32, i32) {
    %c0_i32 = arith.constant 0 : i32
    %c0_i32_0 = arith.constant 0 : i32
    %c0_i32_1 = arith.constant 0 : i32
    return %c0_i32, %c0_i32_0 : i32, i32
  }
  func.func @transform_3(%arg0: i32) -> (i32, i32) {
    %c0_i32 = arith.constant 0 : i32
    %c0_i32_0 = arith.constant 0 : i32
    %c0_i32_1 = arith.constant 0 : i32
    return %c0_i32, %c0_i32_0 : i32, i32
  }
  func.func @transform_4(%arg0: i32) -> (i32, i32) {
    %c0_i32 = arith.constant 0 : i32
    %c0_i32_0 = arith.constant 0 : i32
    %c0_i32_1 = arith.constant 0 : i32
    return %c0_i32, %c0_i32_0 : i32, i32
  }
  func.func @transform_5(%arg0: i32) -> (i32, i32) {
    %c0_i32 = arith.constant 0 : i32
    %c0_i32_0 = arith.constant 0 : i32
    %c0_i32_1 = arith.constant 0 : i32
    return %c0_i32, %c0_i32_0 : i32, i32
  }
  func.func @transform_6(%arg0: i32) -> (i32, i32) {
    %c0_i32 = arith.constant 0 : i32
    %c0_i32_0 = arith.constant 0 : i32
    %c0_i32_1 = arith.constant 0 : i32
    return %c0_i32, %c0_i32_0 : i32, i32
  }
  func.func @transform_7(%arg0: i32) -> (i32, i32) {
    %c0_i32 = arith.constant 0 : i32
    %c0_i32_0 = arith.constant 0 : i32
    %c0_i32_1 = arith.constant 0 : i32
    return %c0_i32, %c0_i32_0 : i32, i32
  }
  func.func @transform_8(%arg0: i32) -> (i32, i32) {
    %c0_i32 = arith.constant 0 : i32
    %c0_i32_0 = arith.constant 0 : i32
    %c0_i32_1 = arith.constant 0 : i32
    return %c0_i32, %c0_i32_0 : i32, i32
  }
  func.func @transform_9(%arg0: i32) -> (i32, i32) {
    %c0_i32 = arith.constant 0 : i32
    %c0_i32_0 = arith.constant 0 : i32
    return %arg0, %c0_i32 : i32, i32
  }
}

</mosaic_0001>

<bundles_post_ra>
// kernel: simple_nn_1.1
= control target key start
LH: loop header
LB: loop body
LE: loop exit
PB: predicated region body
PF: predicated region fallthrough
CT: control target
= control target key end

     0   :  { %vm40_vm0 = vcmask 64512   ;;  %vm190_vm1 = vcmask 7168   ;;  %s424_s1 = inlined_call_operand.vmem [shape: f32[8,128], index: 1, kind: input, shape index: {}]   ;;  %s425_s0 = inlined_call_operand.vmem [shape: f32[8,8], index: 0, kind: input, shape index: {}]   ;;  %s426_s3 = inlined_call_operand.vmem [shape: f32[128,128], index: 3, kind: input, shape index: {}]   ;;  %s427_s2 = inlined_call_operand.vmem [shape: f32[1,128], index: 2, kind: input, shape index: {}]   ;;  %s428_s4 = inlined_call_operand.vmem [shape: f32[1,128], index: 4, kind: input, shape index: {}]   ;;  %s429_s5 = inlined_call_operand.vmem [shape: f32[128,128], index: 5, kind: input, shape index: {}]   ;;  %s430_s6 = inlined_call_operand.vmem [shape: f32[1,128], index: 6, kind: input, shape index: {}]   ;;  %s431_s7 = inlined_call_operand.vmem [shape: f32[128,1], index: 7, kind: input, shape index: {}]   ;;  %s432_s8 = inlined_call_operand.<no memory space> [shape: f32[1,1], index: 8, kind: input, shape index: {}]   ;;  %s433_s9 = inlined_call_operand.vmem [shape: f32[8,1], index: 9, kind: output, shape index: {}]  }
   0x1   :  { %v35_v0 = vld [vmem:[%s424_s1] sm:$0xff]  ;;  %v80_v2 = vld [vmem:[%s426_s3 + $0x78] sm:$0xff]  ;;  %v79_v3 = vld [vmem:[%s426_s3 + $0x70] sm:$0xff]  ;;  %v14_v58 = vstv %s432_s8 }
   0x2   :  { %v34_v1 = vld [vmem:[%s425_s0] sm:$0xff]  ;;  %59 = vmatpush.msra.mxu0 %v35_v0  ;;  %85 = vmatpush.msra.mxu1 %v80_v2  ;;  %v78_v4 = vld [vmem:[%s426_s3 + $0x68] sm:$0xff]  ;;  %v76_v6 = vld [vmem:[%s426_s3 + $0x58] sm:$0xff]  ;;  %15 = vst [vmem:[#allocation2] sm:$0x1] %v14_v58 }
   0x3   :  { %196 = vmatmul.msk.f32.vlgmr.msra.gmra.mxu0 %vm40_vm0, %v34_v1  ;;  %v77_v5 = vld [vmem:[%s426_s3 + $0x60] sm:$0xff]  ;;  %v75_v7 = vld [vmem:[%s426_s3 + $0x50] sm:$0xff]  ;;  %v74_v8 = vld [vmem:[%s426_s3 + $0x48] sm:$0xff] }
   0x4   :  { %86 = vmatpush.msra.mxu1 %v79_v3  ;;  %v73_v9 = vld [vmem:[%s426_s3 + $0x40] sm:$0xff]  ;;  %v72_v10 = vld [vmem:[%s426_s3 + $0x38] sm:$0xff]  ;;  %v71_v11 = vld [vmem:[%s426_s3 + $0x30] sm:$0xff] }
   0x5   :  { %v70_v12 = vld [vmem:[%s426_s3 + $0x28] sm:$0xff]  ;;  %v69_v13 = vld [vmem:[%s426_s3 + $0x20] sm:$0xff]  ;;  %v68_v14 = vld [vmem:[%s426_s3 + $0x18] sm:$0xff] }
   0x6   :  { %87 = vmatpush.msra.mxu1 %v78_v4  ;;  %v67_v15 = vld [vmem:[%s426_s3 + $0x10] sm:$0xff]  ;;  %v66_v16 = vld [vmem:[%s426_s3 + $0x8] sm:$0xff]  ;;  %v65_v17 = vld [vmem:[%s426_s3] sm:$0xff] }
   0x7   :  { %v121_v18 = vld [vmem:[%s429_s5 + $0x78] sm:$0xff]  ;;  %v120_v19 = vld [vmem:[%s429_s5 + $0x70] sm:$0xff]  ;;  %v119_v20 = vld [vmem:[%s429_s5 + $0x68] sm:$0xff] }
   0x8   :  { %88 = vmatpush.msra.mxu1 %v77_v5  ;;  %126 = vmatpush.msra.mxu2 %v121_v18  ;;  %v118_v21 = vld [vmem:[%s429_s5 + $0x60] sm:$0xff]  ;;  %v117_v22 = vld [vmem:[%s429_s5 + $0x58] sm:$0xff]  ;;  %v116_v23 = vld [vmem:[%s429_s5 + $0x50] sm:$0xff] }
   0x9   :  { %v115_v24 = vld [vmem:[%s429_s5 + $0x48] sm:$0xff]  ;;  %v114_v25 = vld [vmem:[%s429_s5 + $0x40] sm:$0xff]  ;;  %v113_v26 = vld [vmem:[%s429_s5 + $0x38] sm:$0xff] }
   0xa   :  { %89 = vmatpush.msra.mxu1 %v76_v6  ;;  %127 = vmatpush.msra.mxu2 %v120_v19  ;;  %v112_v27 = vld [vmem:[%s429_s5 + $0x30] sm:$0xff]  ;;  %v111_v28 = vld [vmem:[%s429_s5 + $0x28] sm:$0xff]  ;;  %v197_v29 = vld [vmem:[%s427_s2] ss:$0 sm:$0xff] }
   0xb   :  { %v110_v33 = vld [vmem:[%s429_s5 + $0x20] sm:$0xff]  ;;  %v109_v34 = vld [vmem:[%s429_s5 + $0x18] sm:$0xff]  ;;  %v108_v35 = vld [vmem:[%s429_s5 + $0x10] sm:$0xff] }
   0xc   :  { %90 = vmatpush.msra.mxu1 %v75_v7  ;;  %128 = vmatpush.msra.mxu2 %v119_v20  ;;  %v107_v36 = vld [vmem:[%s429_s5 + $0x8] sm:$0xff]  ;;  %v106_v37 = vld [vmem:[%s429_s5] sm:$0xff]  ;;  %v162_v38 = vld [vmem:[%s431_s7 + $0x78] sm:$0xff] }
   0xd   :  { %v161_v39 = vld [vmem:[%s431_s7 + $0x70] sm:$0xff]  ;;  %167 = vmatpush.msra.mxu3 %v162_v38  ;;  %v160_v40 = vld [vmem:[%s431_s7 + $0x68] sm:$0xff]  ;;  %v159_v41 = vld [vmem:[%s431_s7 + $0x60] sm:$0xff] }
   0xe   :  { %91 = vmatpush.msra.mxu1 %v74_v8  ;;  %129 = vmatpush.msra.mxu2 %v118_v21  ;;  %v158_v42 = vld [vmem:[%s431_s7 + $0x58] sm:$0xff]  ;;  %v157_v43 = vld [vmem:[%s431_s7 + $0x50] sm:$0xff]  ;;  %v156_v44 = vld [vmem:[%s431_s7 + $0x48] sm:$0xff] }
   0xf   :  { %168 = vmatpush.msra.mxu3 %v161_v39  ;;  %v155_v45 = vld [vmem:[%s431_s7 + $0x40] sm:$0xff]  ;;  %v154_v46 = vld [vmem:[%s431_s7 + $0x38] sm:$0xff]  ;;  %v153_v47 = vld [vmem:[%s431_s7 + $0x30] sm:$0xff] }
  0x10   :  { %92 = vmatpush.msra.mxu1 %v73_v9  ;;  %130 = vmatpush.msra.mxu2 %v117_v22  ;;  %v152_v48 = vld [vmem:[%s431_s7 + $0x28] sm:$0xff]  ;;  %v198_v49 = vld [vmem:[%s428_s4] ss:$0 sm:$0xff]  ;;  %v150_v54 = vld [vmem:[%s431_s7 + $0x18] sm:$0xff] }
  0x11   :  { %169 = vmatpush.msra.mxu3 %v160_v40  ;;  %v151_v53 = vld [vmem:[%s431_s7 + $0x20] sm:$0xff]  ;;  %v149_v55 = vld [vmem:[%s431_s7 + $0x10] sm:$0xff]  ;;  %v148_v56 = vld [vmem:[%s431_s7 + $0x8] sm:$0xff] }
  0x12   :  { %93 = vmatpush.msra.mxu1 %v72_v10  ;;  %131 = vmatpush.msra.mxu2 %v116_v23  ;;  %v147_v57 = vld [vmem:[%s431_s7] sm:$0xff] }
  0x13   :  { %170 = vmatpush.msra.mxu3 %v159_v41  ;;  %v199_v59 = vld [vmem:[%s430_s6] ss:$0 sm:$0xff] }
  0x14   :  { %94 = vmatpush.msra.mxu1 %v71_v11  ;;  %132 = vmatpush.msra.mxu2 %v115_v24  ;;  %v200_v63 = vld [vmem:[#allocation2] ss:$0 sm:$0xff] }
  0x15   :  { %171 = vmatpush.msra.mxu3 %v158_v42 }
  0x16   :  { %95 = vmatpush.msra.mxu1 %v70_v12  ;;  %133 = vmatpush.msra.mxu2 %v114_v25 }
  0x17   :  { %172 = vmatpush.msra.mxu3 %v157_v43 }
  0x18   :  { %96 = vmatpush.msra.mxu1 %v69_v13  ;;  %134 = vmatpush.msra.mxu2 %v113_v26 }
  0x19   :  { %173 = vmatpush.msra.mxu3 %v156_v44 }
  0x1a   :  { %97 = vmatpush.msra.mxu1 %v68_v14  ;;  %135 = vmatpush.msra.mxu2 %v112_v27 }
  0x1b   :  { %174 = vmatpush.msra.mxu3 %v155_v45 }
  0x1c   :  { %98 = vmatpush.msra.mxu1 %v67_v15  ;;  %136 = vmatpush.msra.mxu2 %v111_v28 }
  0x1d   :  { %175 = vmatpush.msra.mxu3 %v154_v46 }
  0x1e   :  { %99 = vmatpush.msra.mxu1 %v66_v16  ;;  %137 = vmatpush.msra.mxu2 %v110_v33 }
  0x1f   :  { %176 = vmatpush.msra.mxu3 %v153_v47 }
  0x20   :  { %100 = vmatpush.msra.mxu1 %v65_v17  ;;  %138 = vmatpush.msra.mxu2 %v109_v34 }
  0x21   :  { %177 = vmatpush.msra.mxu3 %v152_v48 }
  0x22   :  { %139 = vmatpush.msra.mxu2 %v108_v35 }
  0x23   :  { %178 = vmatpush.msra.mxu3 %v151_v53 }
  0x24   :  { %140 = vmatpush.msra.mxu2 %v107_v36 }
  0x25   :  { %179 = vmatpush.msra.mxu3 %v150_v54 }
  0x26   :  { %141 = vmatpush.msra.mxu2 %v106_v37 }
  0x27   :  { %180 = vmatpush.msra.mxu3 %v149_v55 }
  0x29   :  { %181 = vmatpush.msra.mxu3 %v148_v56 }
  0x2b   :  { %182 = vmatpush.msra.mxu3 %v147_v57 }
  0x80   :  { %v61_v30 = vpop.f32.mrf.mxu0 }
  0x81   :  { %v62_v31 = vadd.f32 %v197_v29, %v61_v30 }
  0x83   :  { %201 = vtanh.f32 %v62_v31 }
  0x89   :  { %v202_v32 = vpop.eup %201 }
  0x8a   :  { %101 = vmatmul.f32.vlgmr.msra.gmra.mxu1 %v202_v32 }
 0x107   :  { %v102_v50 = vpop.f32.mrf.mxu1 }
 0x108   :  { %v103_v51 = vadd.f32 %v198_v49, %v102_v50 }
 0x10a   :  { %203 = vtanh.f32 %v103_v51 }
 0x110   :  { %v204_v52 = vpop.eup %203 }
 0x111   :  { %142 = vmatmul.f32.vlgmr.msra.gmra.mxu2 %v204_v52 }
 0x194   :  { %v143_v60 = vpop.f32.mrf.mxu2 }
 0x195   :  { %v144_v61 = vadd.f32 %v199_v59, %v143_v60 }
 0x197   :  { %205 = vtanh.f32 %v144_v61 }
 0x19d   :  { %v206_v62 = vpop.eup %205 }
 0x19e   :  { %183 = vmatmul.f32.vlgmr.msra.gmra.mxu3 %v206_v62 }
 0x221   :  { %v184_v0 = vpop.f32.mrf.mxu3 }
 0x222   :  { %v185_v1 = vadd.f32 %v200_v63, %v184_v0 }
 0x224   :  { %207 = vtanh.f32 %v185_v1 }
 0x22a   :  { %v208_v2 = vpop.eup %207 }
 0x22b   :  { %v188_v3 = vmul.f32 0.5, %v208_v2 }
 0x22d   :  { %v189_v4 = vadd.f32 0.5, %v188_v3 }
 0x22f   :  { %191 = vst.msk [vmem:[%s433_s9] sm:$0xff] %vm190_vm1, %v189_v4 }

</bundles_post_ra>
